<compile_context>
chip_gen: v7x
topology: tpu7x:2x2x1
jax: 0.10.0
libtpu: 0.0.40
codegen_flags: <defaults>
</compile_context>

<pallas_src>
import functools

import jax
import jax.numpy as jnp
from jax.experimental import pallas as pl
from jax.experimental.pallas import tpu as pltpu


def _attn_core_kernel(h2_ref, enc_ref, ctx_ref, scores_ref):
    # h2_ref:  (TB, 1, H)   query (already projected twice by A in the wrapper)
    # enc_ref: (TB, S, H)   encoder outputs
    q = h2_ref[...]                                   # (TB, 1, H)
    enc = enc_ref[...]                                # (TB, S, H)

    # scores_raw[b, 0, s] = sum_h enc[b, s, h] * q[b, 0, h]
    # Batched dot_general contracting on H -- no explicit transpose of enc.
    s = jnp.einsum('bqh,bsh->bqs', q, enc,
                   preferred_element_type=jnp.float32)        # (TB, 1, S)

    # softmax over S (dim=1 of the PyTorch (B, S, 1) layout)
    s = s - jnp.max(s, axis=-1, keepdims=True)
    e = jnp.exp(s)
    denom = jnp.sum(e, axis=-1, keepdims=True)                # (TB, 1, 1)
    p = e * pl.reciprocal(denom, approx=False)                # exact: keeps 1e-5 tol

    # context[b, 0, h] = sum_s p[b, 0, s] * enc[b, s, h]
    ctx = jnp.einsum('bqs,bsh->bqh', p, enc,
                     preferred_element_type=jnp.float32)      # (TB, 1, H)

    ctx_ref[...] = ctx.astype(ctx_ref.dtype)
    scores_ref[...] = p.astype(scores_ref.dtype)


@jax.jit
def luong_attention(hidden_state, encoder_outputs, wa_t, ba, wc_t, bc):
    """hidden_state: (B, 1, H); encoder_outputs: (B, S, H).
    wa_t: (H, H) = A.weight^T, ba: (H,), wc_t: (2H, H) = C.weight^T, bc: (H,).
    Returns (concat (B, H), scores (B, S, 1))."""
    B, _, H = hidden_state.shape
    S = encoder_outputs.shape[1]

    h0 = hidden_state.reshape(B, H)

    # Hoisted shared-weight projections: single M=B matmuls (A applied twice,
    # matching the PyTorch forward).
    h1 = h0 @ wa_t + ba                                       # (B, H)
    h2 = h1 @ wa_t + ba                                       # (B, H)

    # ---- batch-tile selection -------------------------------------------
    # Keep the single (TB, S, H) f32 encoder block under ~8 MiB so the
    # double-buffered pair stays well inside the scoped VMEM limit on every
    # generation (v7x has only 64 MiB physical / 32 MiB scoped default).
    enc_row_bytes = S * H * 4
    tb_cap = max(1, (8 * 1024 * 1024) // enc_row_bytes)
    TB = max(1, min(128, tb_cap, B))
    Bp = ((B + TB - 1) // TB) * TB
    grid_b = Bp // TB

    h2_3d = h2[:, None, :]                                    # (B, 1, H)
    enc = encoder_outputs
    if Bp != B:
        pad = Bp - B
        h2_3d = jnp.pad(h2_3d, ((0, pad), (0, 0), (0, 0)))
        enc = jnp.pad(enc, ((0, pad), (0, 0), (0, 0)))

    ctx3, scores_ld = pl.pallas_call(
        _attn_core_kernel,
        out_shape=(
            jax.ShapeDtypeStruct((Bp, 1, H), jnp.float32),    # context
            jax.ShapeDtypeStruct((Bp, 1, S), jnp.float32),    # scores, lane-dense
        ),
        grid_spec=pltpu.PrefetchScalarGridSpec(
            num_scalar_prefetch=0,
            grid=(grid_b,),
            in_specs=[
                pl.BlockSpec((TB, 1, H), lambda b: (b, 0, 0)),   # h2
                pl.BlockSpec((TB, S, H), lambda b: (b, 0, 0)),   # encoder_outputs
            ],
            out_specs=[
                pl.BlockSpec((TB, 1, H), lambda b: (b, 0, 0)),   # context
                pl.BlockSpec((TB, 1, S), lambda b: (b, 0, 0)),   # scores
            ],
        ),
        compiler_params=pltpu.CompilerParams(
            dimension_semantics=("parallel",),                   # megacore on v7x
            vmem_limit_bytes=32 * 1024 * 1024),
    )(h2_3d, enc)

    ctx = ctx3[:B, 0, :]                                      # (B, H)
    scores = jnp.transpose(scores_ld[:B], (0, 2, 1))          # (B, S, 1), PyTorch layout

    # Hoisted final C projection + tanh: one (B, 2H) x (2H, H) matmul.
    concat = jnp.tanh(jnp.concatenate([h1, ctx], axis=-1) @ wc_t + bc)   # (B, H)
    return concat, scores


def _reference(hidden_state, encoder_outputs, wa_t, ba, wc_t, bc):
    h1 = hidden_state @ wa_t + ba                             # (B, 1, H)
    h2 = h1 @ wa_t + ba                                       # (B, 1, H)
    scores = encoder_outputs @ jnp.swapaxes(h2, -1, -2)       # (B, S, 1)
    scores = jax.nn.softmax(scores, axis=1)
    context = jnp.swapaxes(scores, -1, -2) @ encoder_outputs  # (B, 1, H)
    concat = jnp.concatenate([h1[:, 0, :], context[:, 0, :]], axis=1)    # (B, 2H)
    concat = jnp.tanh(concat @ wc_t + bc)                     # (B, H)
    return concat, scores


if __name__ == "__main__":
    B, S, H = 2, 8, 32

    key = jax.random.PRNGKey(0)
    k1, k2, k3, k4, k5, k6 = jax.random.split(key, 6)

    hidden_state = jax.random.normal(k1, (B, 1, H), dtype=jnp.float32)
    encoder_outputs = jax.random.normal(k2, (B, S, H), dtype=jnp.float32)

    # Deterministic parameter init (synthetic, nn.Linear-shaped).
    wa_t = jax.random.normal(k3, (H, H), dtype=jnp.float32) * (1.0 / jnp.sqrt(H))
    ba = jax.random.normal(k4, (H,), dtype=jnp.float32) * 0.01
    wc_t = jax.random.normal(k5, (2 * H, H), dtype=jnp.float32) * (1.0 / jnp.sqrt(2 * H))
    bc = jax.random.normal(k6, (H,), dtype=jnp.float32) * 0.01

    out, scores = luong_attention(hidden_state, encoder_outputs, wa_t, ba, wc_t, bc)
    jax.block_until_ready((out, scores))

    ref_out, ref_scores = _reference(hidden_state, encoder_outputs, wa_t, ba, wc_t, bc)
    assert out.shape == (B, H) and scores.shape == (B, S, 1)
    assert jnp.allclose(out, ref_out, atol=1e-5, rtol=1e-5)
    assert jnp.allclose(scores, ref_scores, atol=1e-5, rtol=1e-5)

    print("KERNEL_OK")
</pallas_src>

<mosaic_0001>
module attributes {stable_mosaic.version = 11 : i64} {
  func.func @_attn_core_kernel(%arg0: i32, %arg1: memref<2x1x32xf32, #tpu.memory_space<vmem>>, %arg2: memref<2x8x32xf32, #tpu.memory_space<vmem>>, %arg3: memref<2x1x32xf32, #tpu.memory_space<vmem>>, %arg4: memref<2x1x8xf32, #tpu.memory_space<vmem>>) attributes {dimension_semantics = [#tpu.dimension_semantics<parallel>], iteration_bounds = array<i64: 1>, scalar_prefetch = 0 : i64, scratch_operands = 0 : i64, tpu.core_type = #tpu.core_type<tc>, window_params = [{transform_indices = @transform_0, window_bounds = array<i64: 2, 1, 32>}, {transform_indices = @transform_1, window_bounds = array<i64: 2, 8, 32>}, {transform_indices = @transform_2, window_bounds = array<i64: 2, 1, 32>}, {transform_indices = @transform_3, window_bounds = array<i64: 2, 1, 8>}]} {
    %c0 = arith.constant 0 : index
    %c0_0 = arith.constant 0 : index
    %c0_1 = arith.constant 0 : index
    %0 = vector.load %arg1[%c0, %c0_0, %c0_1] : memref<2x1x32xf32, #tpu.memory_space<vmem>>, vector<2x1x32xf32>
    %c0_2 = arith.constant 0 : index
    %c0_3 = arith.constant 0 : index
    %c0_4 = arith.constant 0 : index
    %1 = vector.load %arg2[%c0_2, %c0_3, %c0_4] : memref<2x8x32xf32, #tpu.memory_space<vmem>>, vector<2x8x32xf32>
    "tpu.trace_start"() <{level = 10 : i32, message = "bqh,bsh->bqs"}> : () -> ()
    %cst = arith.constant dense<0.000000e+00> : vector<2x1x8xf32>
    %2 = tpu.matmul %0, %1, %cst {dimension_numbers = #tpu.dot_dimension_numbers<[2], [2], [1], [1], [0, 0, 0, 1, 1, 1], [0], [0]>} : vector<2x1x32xf32>, vector<2x8x32xf32>, vector<2x1x8xf32> -> vector<2x1x8xf32>
    "tpu.trace_stop"() : () -> ()
    %cst_5 = arith.constant dense<0xFF800000> : vector<2x1xf32>
    %3 = vector.multi_reduction <maximumf>, %2, %cst_5 [2] : vector<2x1x8xf32> to vector<2x1xf32>
    %4 = vector.shape_cast %3 : vector<2x1xf32> to vector<2x1x1xf32>
    %5 = vector.broadcast %4 : vector<2x1x1xf32> to vector<2x1x8xf32>
    %6 = arith.subf %2, %5 : vector<2x1x8xf32>
    %7 = math.exp %6 : vector<2x1x8xf32>
    %cst_6 = arith.constant dense<0.000000e+00> : vector<2x1xf32>
    %8 = vector.multi_reduction <add>, %7, %cst_6 [2] : vector<2x1x8xf32> to vector<2x1xf32>
    %9 = vector.shape_cast %8 : vector<2x1xf32> to vector<2x1x1xf32>
    %10 = tpu.reciprocal %9 : vector<2x1x1xf32> -> vector<2x1x1xf32>
    %11 = vector.broadcast %10 : vector<2x1x1xf32> to vector<2x1x8xf32>
    %12 = arith.mulf %7, %11 : vector<2x1x8xf32>
    "tpu.trace_start"() <{level = 10 : i32, message = "bqs,bsh->bqh"}> : () -> ()
    %cst_7 = arith.constant dense<0.000000e+00> : vector<2x1x32xf32>
    %13 = tpu.matmul %12, %1, %cst_7 {dimension_numbers = #tpu.dot_dimension_numbers<[2], [1], [1], [2], [0, 0, 0, 1, 1, 2], [0], [0]>} : vector<2x1x8xf32>, vector<2x8x32xf32>, vector<2x1x32xf32> -> vector<2x1x32xf32>
    "tpu.trace_stop"() : () -> ()
    %c0_8 = arith.constant 0 : index
    %c0_9 = arith.constant 0 : index
    %c0_10 = arith.constant 0 : index
    %14 = vector.load %arg3[%c0_8, %c0_9, %c0_10] : memref<2x1x32xf32, #tpu.memory_space<vmem>>, vector<2x1x32xf32>
    tpu.vector_store %arg3[%c0_8, %c0_9, %c0_10], %13 {strides = array<i32>} : memref<2x1x32xf32, #tpu.memory_space<vmem>>, vector<2x1x32xf32>,
    %c0_11 = arith.constant 0 : index
    %c0_12 = arith.constant 0 : index
    %c0_13 = arith.constant 0 : index
    %15 = vector.load %arg4[%c0_11, %c0_12, %c0_13] : memref<2x1x8xf32, #tpu.memory_space<vmem>>, vector<2x1x8xf32>
    tpu.vector_store %arg4[%c0_11, %c0_12, %c0_13], %12 {strides = array<i32>} : memref<2x1x8xf32, #tpu.memory_space<vmem>>, vector<2x1x8xf32>,
    return
  }
  func.func @transform_0(%arg0: i32) -> (i32, i32, i32) {
    %c0_i32 = arith.constant 0 : i32
    %c0_i32_0 = arith.constant 0 : i32
    %c0_i32_1 = arith.constant 0 : i32
    return %arg0, %c0_i32, %c0_i32_0 : i32, i32, i32
  }
  func.func @transform_1(%arg0: i32) -> (i32, i32, i32) {
    %c0_i32 = arith.constant 0 : i32
    %c0_i32_0 = arith.constant 0 : i32
    %c0_i32_1 = arith.constant 0 : i32
    return %arg0, %c0_i32, %c0_i32_0 : i32, i32, i32
  }
  func.func @transform_2(%arg0: i32) -> (i32, i32, i32) {
    %c0_i32 = arith.constant 0 : i32
    %c0_i32_0 = arith.constant 0 : i32
    %c0_i32_1 = arith.constant 0 : i32
    return %arg0, %c0_i32, %c0_i32_0 : i32, i32, i32
  }
  func.func @transform_3(%arg0: i32) -> (i32, i32, i32) {
    %c0_i32 = arith.constant 0 : i32
    %c0_i32_0 = arith.constant 0 : i32
    %c0_i32_1 = arith.constant 0 : i32
    return %arg0, %c0_i32, %c0_i32_0 : i32, i32, i32
  }
}

</mosaic_0001>

<bundles_post_ra>
// kernel: luong_attention.1
= control target key start
LH: loop header
LB: loop body
LE: loop exit
PB: predicated region body
PF: predicated region fallthrough
CT: control target
= control target key end

     0   :  { %vm18_vm0 = vcmask 261120   ;;  %v437_v1 = vmov 0.0   ;;  %vm438_vm1 = vmmov 0   ;;  %s506_s0 = inlined_call_operand.vmem [shape: f32[2,1,32], index: 0, kind: input, shape index: {}]   ;;  %s507_s1 = inlined_call_operand.vmem [shape: f32[2,8,32], index: 1, kind: input, shape index: {}]   ;;  %s508_s2 = inlined_call_operand.vmem [shape: f32[2,1,32], index: 2, kind: output, shape index: {0}]   ;;  %s509_s3 = inlined_call_operand.hbm [shape: f32[2,1,8], index: 3, kind: output, shape index: {1}]  }
   0x1   :  { %v16_v0 = vld [vmem:[%s507_s1] sm:$0xff]  ;;  %380 = vmatprep.subr.mxu0 %v437_v1  ;;  %382 = vmatprep.mubr.msk.f32.mxu0 %vm438_vm1, %v437_v1  ;;  %v17_v2 = vld [vmem:[%s507_s1 + $0x8] sm:$0xff] }
   0x2   :  { %9 = vsyncpa [#allocation3], 0  ;;  %381 = vmatpush3.xpose.msk.msra.mxu0 %vm18_vm0, %v16_v0  ;;  %385 = vmatprep.subr.mxu1 %v437_v1  ;;  %v14_v3 = vld [vmem:[%s506_s0] sm:$0x1]  ;;  %v15_v4 = vld [vmem:[%s506_s0 + $0x1] sm:$0x1] }
   0x3   :  { %386 = vmatpush3.xpose.msk.msra.mxu1 %vm18_vm0, %v17_v2  ;;  %387 = vmatprep.mubr.msk.f32.mxu1 %vm438_vm1, %v437_v1  ;;  %vm171_vm2 = vcmask 57344   ;;  %vm194_vm3 = vcmask 64512   ;;  %s439_s0 = smov [#allocation2]  }
   0x4   :  { %390 = vmatprep.subr.mxu0 %v437_v1  ;;  %395 = vmatprep.subr.mxu1 %v437_v1  ;;  %s353_s1 = sshll.u32 %s439_s0, 4  ;;  %s354_s1 = int_to_ptr.vmem [resolvable:$true] %s353_s1 }
   0x5   :  { %383 = vmatmul.mubr.msk.f32.vlgmr.msra.gmra.mrb[0].mxu0 %vm18_vm0, %v14_v3  ;;  %s413_s20 = scalar_lea.vmem %s354_s1, 32  ;;  %p418_p1 = scmp.lt.s32.totalorder %s354_s1, %s354_s1 }
   0x6   :  { %388 = vmatmul.mubr.msk.f32.vlgmr.msra.gmra.mrb[0].mxu1 %vm18_vm0, %v15_v4  ;;  %391 = vmatpush3.msra.mxu0 %v16_v0  ;;  %p414_p0 = scmp.ne.s32.totalorder %s354_s1, %s413_s20  ;;  %p419_p2 = scmp.lt.s32.totalorder %s413_s20, %s413_s20 }
   0x7   :  { %392 = vmatprep.mubr.msk.f32.mxu0 %vm438_vm1, %v437_v1  ;;  %396 = vmatpush3.msra.mxu1 %v17_v2 }
   0x8   :  { %397 = vmatprep.mubr.msk.f32.mxu1 %vm438_vm1, %v437_v1  ;;  %p420_p3 = por %p419_p2, %p418_p1 }
   0xa   :  { %p421_p4 = pnand %p420_p3, %p414_p0 }
  0xd8   :  { %v91_v5 = vpop.f32.mrb[0].mxu0 }
  0xd9   :  { %v384_v6 = vpop.f32.mrb[1].mxu0  ;;  %v172_v7 = vsel %vm171_vm2, %v91_v5, -inf  ;;  %v167_v8 = vpop.f32.mrb[0].mxu1 }
  0xda   :  { %173 = vmax.xlane.f32.xlu0 %v172_v7  ;;  %v389_v9 = vpop.f32.mrb[1].mxu1  ;;  %v175_v10 = vsel %vm171_vm2, %v167_v8, -inf }
  0xde   :  { %176 = vmax.xlane.f32.xlu0 %v175_v10 }
 0x167   :  { %v174_v11 = vpop.xlane.xlu0 %173 }
 0x168   :  { %v178_v12 = vsub.f32 %v91_v5, %v174_v11 }
 0x16a   :  { %v180_v13 = vmul.f32 1.442695, %v178_v12 }
 0x16b   :  { %v177_v14 = vpop.xlane.xlu0 %176 }
 0x16c   :  { %405 = vpow2.f32 %v180_v13  ;;  %v179_v15 = vsub.f32 %v167_v8, %v177_v14 }
 0x16e   :  { %v182_v16 = vmul.f32 1.442695, %v179_v15 }
 0x170   :  { %407 = vpow2.f32 %v182_v16 }
 0x176   :  { %v406_v17 = vpop.eup %405 }
 0x177   :  { %v184_v18 = vsel %vm171_vm2, %v406_v17, 0.0 }
 0x178   :  { %185 = vadd.xlane.f32.xlu1 %v184_v18 }
 0x17a   :  { %v408_v19 = vpop.eup %407 }
 0x17b   :  { %v187_v20 = vsel %vm171_vm2, %v408_v19, 0.0 }
 0x17c   :  { %188 = vadd.xlane.f32.xlu1 %v187_v20 }
 0x205   :  { %v186_v21 = vpop.xlane.xlu1 %185 }
 0x206   :  { %409 = vrcp.f32 %v186_v21 }
 0x209   :  { %v189_v22 = vpop.xlane.xlu1 %188 }
 0x20a   :  { %411 = vrcp.f32 %v189_v22 }
 0x210   :  { %v410_v23 = vpop.eup %409 }
 0x211   :  { %v192_v24 = vmul.f32 %v410_v23, %v406_v17 }
 0x213   :  { %344 = vst.msk [vmem:[#allocation2] sm:$0x1] %vm171_vm2, %v192_v24  ;;  %393 = vmatmul.mubr.msk.f32.vlgmr.msra.gmra.mrb[2].mxu0 %vm194_vm3, %v192_v24 }
 0x214   :  { %v412_v25 = vpop.eup %411 }
 0x215   :  { %v193_v26 = vmul.f32 %v412_v25, %v408_v19 }
 0x217   :  { %345 = vst.msk [vmem:[#allocation2 + $0x1] sm:$0x1] %vm171_vm2, %v193_v26  ;;  %398 = vmatmul.mubr.msk.f32.vlgmr.msra.gmra.mrb[2].mxu1 %vm194_vm3, %v193_v26 }
 0x218   :  { %424 = shalt.err (!%p421_p4)
}
 0x219   :  { %s425_s23 = scalar_lea.hbm %s509_s3, 32 }
 0x21a   :  { %p426_p5 = scmp.ne.s32.totalorder %s509_s3, %s425_s23  ;;  %p429_p6 = scmp.lt.u32.totalorder %s425_s23, %s509_s3 }
 0x21c   :  { %p431_p7 = pnand %p429_p6, %p426_p5 }
 0x21e   :  { %434 = shalt.err (!%p431_p7)
}
 0x21f   :  { %s440_s28 = smov 16   ;;  %s441_s29 = smov 1   ;;  %vm341_vm4 = vcmask 253952  }
 0x220   :  { %359 = dma.vmem_to_hbm [thread:$0]  %s354_s1, 32, %s509_s3, [#allocation3], %s440_s28, %s440_s28, %s441_s29  }
 0x2e6   :  { %v264_v27 = vpop.f32.mrb[2].mxu0 }
 0x2e7   :  { %342 = vst.msk [vmem:[%s508_s2] sm:$0x1] %vm341_vm4, %v264_v27  ;;  %v394_v28 = vpop.f32.mrb[3].mxu0 }
 0x2ea   :  { %v337_v29 = vpop.f32.mrb[2].mxu1 }
 0x2eb   :  { %343 = vst.msk [vmem:[%s508_s2 + $0x1] sm:$0x1] %vm341_vm4, %v337_v29  ;;  %v399_v30 = vpop.f32.mrb[3].mxu1 }
 0x2ec   :  { %435 = dma.done.wait [#allocation3], 32  }
 0x2ed   :  { %436 = vsyncadd [#allocation3], 4294967264 }
 0x2ee   :  { %365 = vsyncpa [#allocation3], 1 }

</bundles_post_ra>
